<compile_context>
chip_gen: v7x
topology: tpu7x:2x2x1
jax: 0.10.0
libtpu: 0.0.40
codegen_flags: <defaults>
</compile_context>

<pallas_src>
import math

import jax
import jax.numpy as jnp
from jax.experimental import pallas as pl
from jax.experimental.pallas import tpu as pltpu


def _build_pe(d_model: int, max_seq_length: int = 32) -> jnp.ndarray:
    """Deterministic sin/cos positional-encoding table, shape (1, max_seq_length, d_model)."""
    assert d_model % 2 == 0, "PositionalEncoding assumes an even d_model"
    position = jnp.arange(0, max_seq_length, dtype=jnp.float32)[:, None]        # (L, 1)
    div_term = jnp.exp(
        jnp.arange(0, d_model, 2, dtype=jnp.float32) * (-math.log(10000.0) / d_model)
    )                                                                            # (D/2,)
    pe = jnp.zeros((max_seq_length, d_model), dtype=jnp.float32)
    pe = pe.at[:, 0::2].set(jnp.sin(position * div_term))
    pe = pe.at[:, 1::2].set(jnp.cos(position * div_term))
    return pe[None, :, :]                                                        # (1, L, D)


def _add_pe_kernel(x_ref, pe_ref, o_ref):
    # x_ref/o_ref: (Bt, tr, C) tile; pe_ref: (1, tr, C) batch-invariant tile (broadcast add).
    o_ref[...] = (x_ref[...] + pe_ref[...]).astype(o_ref.dtype)


def _sublane(itemsize: int) -> int:
    # Sub-32-bit dtypes pack along sublanes: 8 rows for f32, 16 for bf16, 32 for int8/fp8.
    return max(8, 32 // max(itemsize, 1))


def _choose_row_tile(rows: int, cols: int, itemsize: int,
                     *, target_block_bytes: int, max_rows: int = 4096) -> int:
    """Row tile: sublane-aligned, targeting ~target_block_bytes of x data per block."""
    sub = _sublane(itemsize)
    if rows <= sub:
        return rows                               # block == full dim (exempt from (8,128) rule)
    row_bytes = max(cols * itemsize, 1)
    t = min(rows, max_rows, max(sub, target_block_bytes // row_bytes))
    t = max(sub, (t // sub) * sub)                # keep it sublane-aligned
    return min(t, rows)


def positional_encoding_forward(x: jnp.ndarray, pe: jnp.ndarray,
                                *, force_pallas: bool = False,
                                min_pallas_elements: int = 1 << 16,
                                target_block_bytes: int = 4 << 20,
                                donate_x: bool = False) -> jnp.ndarray:
    """x: (B, S, D); pe: (1, max_seq_length, D). Returns x + pe[:, :S, :] in x.dtype."""
    B, S, D = x.shape
    if S > pe.shape[1]:
        raise ValueError(
            f"seq_len={S} exceeds the positional-encoding table length {pe.shape[1]}")
    # Stream pe in x.dtype: halves pe HBM/VMEM traffic when x is bf16/f16.
    # (Bit-exact vs the fp32-table PyTorch module for f32 x; tiny rounding delta otherwise.)
    pe_slice = pe[:, :S, :].astype(x.dtype)

    # For tiny problems a fused XLA add beats any pallas_call launch; route by size.
    if not force_pallas and B * S * D < min_pallas_elements:
        return (x + pe_slice).astype(x.dtype)

    itemsize = jnp.dtype(x.dtype).itemsize
    sub = _sublane(itemsize)

    # Lane-dense layout: trailing dim a multiple of 128 -> full-width vst, not masked vst.msk.
    pad_cols = 0
    if D % 128 == 0:
        rows, cols = S, D
        x2, pe2 = x, pe_slice
    elif (S * D) % 128 == 0:
        cols = 128
        rows = (S * D) // 128
        x2 = x.reshape(B, rows, cols)              # contiguous view; position-wise identical add
        pe2 = pe_slice.reshape(1, rows, cols)
    else:
        # Rare fallback: pad the trailing dim up to a multiple of 128 and slice it off after.
        # Costs one extra pad/slice pass over x in the wrapper but keeps the kernel's stores
        # lane-dense.
        cols = ((D + 127) // 128) * 128
        pad_cols = cols - D
        rows = S
        x2 = jnp.pad(x, ((0, 0), (0, 0), (0, pad_cols)))
        pe2 = jnp.pad(pe_slice, ((0, 0), (0, 0), (0, pad_cols)))

    tr = _choose_row_tile(rows, cols, itemsize, target_block_bytes=target_block_bytes)
    seq_tiles = pl.cdiv(rows, tr)

    # v7x megacore: when B == 1, make sure the sharded (seq) axis has >= 2 blocks.
    if seq_tiles == 1 and B == 1 and rows >= 2 * sub:
        tr = min(rows, max(sub, (((rows + 1) // 2 + sub - 1) // sub) * sub))
        seq_tiles = pl.cdiv(rows, tr)

    pe_item = jnp.dtype(pe2.dtype).itemsize
    if seq_tiles == 1:
        # The whole (reshaped/padded) sequence fits one block: block over batch instead so
        # grid steps carry large DMAs and both v7x TensorCores get work when B >= 2.
        block_bytes = max(rows * cols * itemsize, 1)
        Bt = max(1, min(B, target_block_bytes // block_bytes))
        if B >= 2:
            Bt = min(Bt, (B + 1) // 2)            # guarantee >= 2 batch blocks (megacore)
        batch_tiles = pl.cdiv(B, Bt)
        grid = (batch_tiles,)
        in_specs = [
            pl.BlockSpec((Bt, rows, cols), lambda b: (b, 0, 0)),
            # pe block index constant across all steps -> fetched once by the pipeline.
            pl.BlockSpec((1, rows, cols), lambda b: (0, 0, 0)),
        ]
        out_spec = pl.BlockSpec((Bt, rows, cols), lambda b: (b, 0, 0))
        dim_sem = ("parallel",)
        x_block_bytes = Bt * rows * cols * itemsize
        pe_block_bytes = rows * cols * pe_item
    else:
        # Seq-outer / batch-inner grid: the pe block index is constant across the inner batch
        # steps, so it is re-used rather than re-fetched (pe never broadcast to (B,S,D) in HBM).
        grid = (seq_tiles, B)
        in_specs = [
            pl.BlockSpec((1, tr, cols), lambda s, b: (b, s, 0)),
            pl.BlockSpec((1, tr, cols), lambda s, b: (0, s, 0)),
        ]
        out_spec = pl.BlockSpec((1, tr, cols), lambda s, b: (b, s, 0))
        dim_sem = ("parallel", "parallel")
        x_block_bytes = tr * cols * itemsize
        pe_block_bytes = tr * cols * pe_item

    # Explicit scoped-VMEM limit: double-buffered (x + out + pe) blocks plus headroom.
    # With 4 MiB x-blocks this is ~24-28 MiB, safe on v5e/v6e/v7x (64 MiB physical on v7x).
    footprint = 2 * (2 * x_block_bytes + pe_block_bytes)
    vmem_limit = int(min(48 << 20, max(32 << 20, footprint + (4 << 20))))

    # TODO(synk): for B<=4, generate pe in-kernel (iota + sin/cos on the idle EUP) instead of
    # streaming it from HBM to cut ~1/(2B+1) of total traffic.
    out2 = pl.pallas_call(
        _add_pe_kernel,
        out_shape=jax.ShapeDtypeStruct((B, rows, cols), x.dtype),
        grid_spec=pltpu.PrefetchScalarGridSpec(
            num_scalar_prefetch=0,
            grid=grid,
            in_specs=in_specs,
            out_specs=out_spec,
        ),
        compiler_params=pltpu.CompilerParams(
            dimension_semantics=dim_sem,
            vmem_limit_bytes=vmem_limit,
        ),
        # Optional in-place update (only safe if the caller does not reuse x afterwards).
        input_output_aliases=({0: 0} if donate_x else {}),
    )(x2, pe2)

    if pad_cols:
        out2 = out2[:, :, :D]
    return out2.reshape(B, S, D)


if __name__ == "__main__":
    key = jax.random.PRNGKey(0)

    # Case 1: module-sized shapes (batch=2, seq=8, d_model=32) — exercises the (S*D)%128==0
    # reshape layout and the batch-blocked 1-D grid.
    B, S, D = 2, 8, 32
    pe = _build_pe(D, max_seq_length=32)
    x = jax.random.normal(key, (B, S, D), dtype=jnp.float32)
    out = jax.block_until_ready(positional_encoding_forward(x, pe, force_pallas=True))
    ref = x + pe[:, :S, :]
    assert out.shape == (B, S, D)
    assert jnp.allclose(out, ref, atol=1e-6), "mismatch vs reference (case 1)"

    # Case 2: D multiple of 128 with a tiny block target — exercises the 2-D seq-tiled grid.
    B2, S2, D2 = 2, 32, 256
    pe2 = _build_pe(D2, max_seq_length=32)
    x2 = jax.random.normal(jax.random.fold_in(key, 1), (B2, S2, D2), dtype=jnp.float32)
    out2 = jax.block_until_ready(
        positional_encoding_forward(x2, pe2, force_pallas=True, target_block_bytes=4096))
    ref2 = x2 + pe2[:, :S2, :]
    assert jnp.allclose(out2, ref2, atol=1e-6), "mismatch vs reference (case 2)"

    # Case 3: D not a multiple of 128 and S*D not a multiple of 128 — exercises the padded path.
    B3, S3, D3 = 2, 5, 40
    pe3 = _build_pe(D3, max_seq_length=8)
    x3 = jax.random.normal(jax.random.fold_in(key, 2), (B3, S3, D3), dtype=jnp.float32)
    out3 = jax.block_until_ready(positional_encoding_forward(x3, pe3, force_pallas=True))
    ref3 = x3 + pe3[:, :S3, :]
    assert jnp.allclose(out3, ref3, atol=1e-6), "mismatch vs reference (case 3)"

    print("KERNEL_OK")
</pallas_src>

<mosaic_0001>
module attributes {stable_mosaic.version = 11 : i64} {
  func.func @_add_pe_kernel(%arg0: i32, %arg1: memref<1x2x128xf32, #tpu.memory_space<vmem>>, %arg2: memref<1x2x128xf32, #tpu.memory_space<vmem>>, %arg3: memref<1x2x128xf32, #tpu.memory_space<vmem>>) attributes {dimension_semantics = [#tpu.dimension_semantics<parallel>], iteration_bounds = array<i64: 2>, scalar_prefetch = 0 : i64, scratch_operands = 0 : i64, tpu.core_type = #tpu.core_type<tc>, window_params = [{transform_indices = @transform_0, window_bounds = array<i64: 1, 2, 128>}, {pipeline_mode = #tpu.pipeline_mode<synchronous>, transform_indices = @transform_1, window_bounds = array<i64: 1, 2, 128>}, {transform_indices = @transform_2, window_bounds = array<i64: 1, 2, 128>}]} {
    %c0 = arith.constant 0 : index
    %c0_0 = arith.constant 0 : index
    %c0_1 = arith.constant 0 : index
    %0 = vector.load %arg1[%c0, %c0_0, %c0_1] : memref<1x2x128xf32, #tpu.memory_space<vmem>>, vector<1x2x128xf32>
    %c0_2 = arith.constant 0 : index
    %c0_3 = arith.constant 0 : index
    %c0_4 = arith.constant 0 : index
    %1 = vector.load %arg2[%c0_2, %c0_3, %c0_4] : memref<1x2x128xf32, #tpu.memory_space<vmem>>, vector<1x2x128xf32>
    %2 = arith.addf %0, %1 : vector<1x2x128xf32>
    %c0_5 = arith.constant 0 : index
    %c0_6 = arith.constant 0 : index
    %c0_7 = arith.constant 0 : index
    %3 = vector.load %arg3[%c0_5, %c0_6, %c0_7] : memref<1x2x128xf32, #tpu.memory_space<vmem>>, vector<1x2x128xf32>
    tpu.vector_store %arg3[%c0_5, %c0_6, %c0_7], %2 {strides = array<i32>} : memref<1x2x128xf32, #tpu.memory_space<vmem>>, vector<1x2x128xf32>,
    return
  }
  func.func @transform_0(%arg0: i32) -> (i32, i32, i32) {
    %c0_i32 = arith.constant 0 : i32
    %c0_i32_0 = arith.constant 0 : i32
    %c0_i32_1 = arith.constant 0 : i32
    return %arg0, %c0_i32, %c0_i32_0 : i32, i32, i32
  }
  func.func @transform_1(%arg0: i32) -> (i32, i32, i32) {
    %c0_i32 = arith.constant 0 : i32
    %c0_i32_0 = arith.constant 0 : i32
    %c0_i32_1 = arith.constant 0 : i32
    %c0_i32_2 = arith.constant 0 : i32
    return %c0_i32, %c0_i32_0, %c0_i32_1 : i32, i32, i32
  }
  func.func @transform_2(%arg0: i32) -> (i32, i32, i32) {
    %c0_i32 = arith.constant 0 : i32
    %c0_i32_0 = arith.constant 0 : i32
    %c0_i32_1 = arith.constant 0 : i32
    return %arg0, %c0_i32, %c0_i32_0 : i32, i32, i32
  }
}

</mosaic_0001>

<bundles_post_ra>
// kernel: tpu_custom_call.1
= control target key start
LH: loop header
LB: loop body
LE: loop exit
PB: predicated region body
PF: predicated region fallthrough
CT: control target
= control target key end

     0   :  { %7 = vsyncpa [#allocation3], 0  ;;  %s584_s0 = inlined_call_operand.hbm [shape: f32[2,2,128], index: 0, kind: input, shape index: {}]   ;;  %s585_s1 = inlined_call_operand.vmem [shape: f32[1,2,128], index: 1, kind: input, shape index: {}]   ;;  %s586_s2 = inlined_call_operand.hbm [shape: f32[2,2,128], index: 2, kind: output, shape index: {}]  }
   0x1   :  { %9 = vsyncpa [#allocation3 + $0x1], 0 }
   0x2   :  { %10 = vsyncpa [#allocation4], 0 }
   0x3   :  { %12 = vsyncpa [#allocation4 + $0x1], 0  ;;  %s420_s9 = smov 0   ;;  %s422_s10 = smov 0  }
   0x4   :  { %s424_s11 = smov 0   ;;  %s426_s12 = smov 0  }
   0x5 LB: > { %s441_s13 = sadd.s32 4294967295, %s401_s12   ;;  %s247_s14 = sadd.s32 4294967294, %s401_s12   ;;  %s401_s12 = sphi %s426_s12, %s601_s12   ;;  %s397_s11 = sphi %s424_s11, %s600_s11   ;;  %s393_s10 = sphi %s422_s10, %s599_s10   ;;  %s389_s9 = sphi %s420_s9, %s598_s9  }
   0x6   : > { %s445_s15 = sadd.s32 1, %s401_s12   ;;  %s25_s16 = sadd.s32 1, %s397_s11 }
   0x7   : > { %s22_s17 = ssub.s32 %s401_s12, %s445_s15  ;;  %p32_p0 = scmp.ne.s32.totalorder %s397_s11, %s393_s10 }
   0x8   : > { %p23_p1 = scmp.eq.s32.totalorder %s22_s17, 0  ;;  %p33_p2 = scmp.eq.s32.totalorder %s401_s12, 0 }
   0x9   : > { %p38_p3 = scmp.ne.s32.totalorder %s393_s10, %s389_s9  ;;  %p39_p4 = scmp.eq.s32.totalorder %s441_s13, 0 }
   0xa   : > { %s457_s18 = scalar_select %p23_p1, %s397_s11, %s25_s16  }
   0xb   : > { %p459_p5 = por %p33_p2, %p32_p0  ;;  %p463_p6 = por %p39_p4, %p38_p3 }
   0xc   : > { %p83_p7 = scmp.eq.s32.totalorder %s441_s13, 1  ;;  %p89_p8 = scmp.eq.s32.totalorder %s247_s14, 1 }
   0xd   : > { %p271_p10 = scmp.lt.s32.totalorder %s401_s12, 2  ;;  %s112_s23 = sand.u32 1, %s397_s11  }
   0xe   : > { %p470_p11 = por %p83_p7, %p32_p0  ;;  %p474_p12 = por %p89_p8, %p38_p3 }
   0xf   : > { %s251_s24 = sshll.u32 %s401_s12, 5  ;;  %s250_s25 = sshll.u32 %s112_s23, 1 }
  0x10   : > { %s590_s21 = scalar_select %p470_p11, 1, 0 }
  0x11   : > { %s591_s22 = scalar_select %p474_p12, 1, 0 }
  0x12   : > { %s483_s28 = scalar_lea.hbm %s584_s0, %s251_s24  ;;  %s116_s29 = scalar_lea.vmem [#allocation2], %s250_s25 }
  0x13   : > { %s123_s30 = sshll.u32 %s116_s29, 4  ;;  %p487_p13 = pnand %p271_p10, %p459_p5  ;;  %s491_s30 = int_to_ptr.vmem [resolvable:$true] %s123_s30 }
  0x14   : > { %s113_s4 = scalar_lea.sflag [#allocation3], %s112_s23  ;;  %s305_s5 = scalar_lea.hbm %s483_s28, 32 }
  0x15   : > { %p306_p2 = scmp.ne.s32.totalorder %s483_s28, %s305_s5  ;;  %p307_p3 = pneg %p487_p13 }
  0x16   : > { %s310_s8 = scalar_lea.hbm %s584_s0, 64  ;;  %p311_p5 = scmp.lt.u32.totalorder %s483_s28, %s584_s0 }
  0x17   : > { %p308_p4 = pnand %p307_p3, %p306_p2  ;;  %p312_p8 = scmp.lt.u32.totalorder %s310_s8, %s305_s5 }
  0x18   : > { %p314_p9 = scmp.lt.u32.totalorder %s305_s5, %s483_s28 }
  0x19   : > { %p309_p7 = pneg %p308_p4  ;;  %p313_p10 = por %p312_p8, %p311_p5 }
  0x1b   : > { %p315_p0 = por %p314_p9, %p313_p10 }
  0x1d   : > { %p316_p1 = pnand %p315_p0, %p309_p7 }
  0x1f   : > { %319 = shalt.err (!%p316_p1)
}
  0x20   : > { %s320_s17 = scalar_lea.vmem %s491_s30, 32  ;;  %s403_s19 = smov [#allocation2]  }
  0x21   : > { %p321_p2 = scmp.ne.s32.totalorder %s491_s30, %s320_s17  ;;  %s325_s23 = sshll.u32 %s403_s19, 4  ;;  %s326_s23 = int_to_ptr.vmem [resolvable:$false] %s325_s23 }
  0x22   : > { %s327_s24 = scalar_lea.vmem %s326_s23, 64  ;;  %p328_p11 = scmp.lt.s32.totalorder %s491_s30, %s326_s23 }
  0x23   : > { %p323_p4 = pnand %p321_p2, %p307_p3  ;;  %p329_p5 = scmp.lt.s32.totalorder %s327_s24, %s320_s17 }
  0x25   : > { %p324_p12 = pneg %p323_p4  ;;  %p330_p8 = por %p329_p5, %p328_p11 }
  0x27   : > { %p331_p9 = pnand %p330_p8, %p324_p12 }
  0x29   : > { %334 = shalt.err (!%p331_p9)
}
  0x2a   : > { %266 = dma.hbm_to_vmem [thread:$0]  (!%p487_p13), %s483_s28, 32, %s491_s30, %s113_s4  }
  0x2b   : > { %p593_p0 = scmp.lt.s32.totalorder %s401_s12, 3  ;;  %p594_p1 = scmp.ge.s32.totalorder %s401_s12, 1 }
  0x2d   : > { %p129_p3 = pnand %p594_p1, %p593_p0 }
  0x2e   : > { %s525_s25 = sand.u32 (!%p129_p3), 1, %s393_s10  }
  0x2f   : > { %132 = sbr.rel (%p129_p3) target bundleno = 81 (0x51), region = 28  ;;  %s253_s26 = sshll.u32 (!%p129_p3), %s525_s25, 1 }
  0x30   : > { %s135_s27 = scalar_lea.sflag (!%p129_p3), [#allocation3], %s525_s25  ;;  %s138_s29 = scalar_lea.vmem (!%p129_p3), [#allocation2], %s253_s26 }
  0x36   : > { %380 = dma.done.wait (%p463_p6), %s135_s27, 32  }
  0x37   : > { %382 = vsyncadd (%p463_p6), %s135_s27, 4294967264  ;;  %s158_s28 = scalar_lea.vmem [#allocation5], %s253_s26  ;;  %s256_s3 = sshll.u32 %s441_s13, 5  ;;  %v159_v0 = vld [vmem:[%s138_s29] sm:$0x3] }
  0x38   : > { %s177_s30 = sshll.u32 %s158_s28, 4  ;;  %v160_v1 = vld [vmem:[%s585_s1] sm:$0x3]  ;;  %s542_s20 = scalar_lea.hbm %s586_s2, %s256_s3  ;;  %s537_s30 = int_to_ptr.vmem [resolvable:$true] %s177_s30 }
  0x39   : > { %v161_v2 = vadd.f32 %v160_v1, %v159_v0  ;;  %s164_s8 = scalar_lea.sflag [#allocation4], %s525_s25  ;;  %s335_s14 = scalar_lea.vmem %s537_s30, 32 }
  0x3a   : > { %p336_p6 = scmp.ne.s32.totalorder %s537_s30, %s335_s14  ;;  %p595_p11 = scmp.ne.s32.totalorder %s590_s21, 0 }
  0x3b   : > { %162 = vst [vmem:[%s158_s28] sm:$0x3] %v161_v2  ;;  %s404_s13 = smov [#allocation5]  }
  0x3c   : > { %p337_p12 = pnand %p336_p6, %p595_p11  ;;  %s339_s16 = sshll.u32 %s404_s13, 4  ;;  %s340_s16 = int_to_ptr.vmem [resolvable:$false] %s339_s16 }
  0x3d   : > { %s341_s17 = scalar_lea.vmem %s340_s16, 64  ;;  %p342_p7 = scmp.lt.s32.totalorder %s537_s30, %s340_s16 }
  0x3e   : > { %p338_p13 = pneg %p337_p12  ;;  %p343_p10 = scmp.lt.s32.totalorder %s341_s17, %s335_s14 }
  0x40   : > { %p344_p2 = por %p343_p10, %p342_p7 }
  0x42   : > { %p345_p4 = pnand %p344_p2, %p338_p13 }
  0x44   : > { %348 = shalt.err (!%p345_p4)
}
  0x45   : > { %s349_s19 = scalar_lea.hbm %s542_s20, 32  ;;  %s353_s25 = scalar_lea.hbm %s586_s2, 64 }
  0x46   : > { %p350_p5 = scmp.ne.s32.totalorder %s542_s20, %s349_s19  ;;  %p354_p0 = scmp.lt.u32.totalorder %s542_s20, %s586_s2 }
  0x47   : > { %p355_p1 = scmp.lt.u32.totalorder %s353_s25, %s349_s19  ;;  %p357_p6 = scmp.lt.u32.totalorder %s349_s19, %s542_s20 }
  0x48   : > { %p351_p8 = pnand %p350_p5, %p595_p11 }
  0x49   : > { %p356_p3 = por %p355_p1, %p354_p0 }
  0x4a   : > { %p352_p9 = pneg %p351_p8 }
  0x4b   : > { %p358_p12 = por %p357_p6, %p356_p3 }
  0x4d   : > { %p359_p13 = pnand %p358_p12, %p352_p9 }
  0x4f   : > { %362 = shalt.err (!%p359_p13)
}
  0x50   : > { %261 = dma.vmem_to_hbm [thread:$0]  (%p595_p11), %s537_s30, 32, %s542_s20, %s164_s8  }
  0x51 PF: > { %s189_s29 = sand.u32 1, %s389_s9   ;;  %p596_p7 = scmp.ne.s32.totalorder %s591_s22, 0 }
  0x52   : > { %p597_p10 = scmp.ge.s32.totalorder %s401_s12, 2  ;;  %s190_s28 = scalar_lea.sflag [#allocation4], %s189_s29 }
  0x54   : > { %p268_p2 = pnand %p597_p10, %p596_p7 }
  0x56   : > { %384 = dma.done.wait (!%p268_p2), %s190_s28, 32  }
  0x57   : > { %386 = vsyncadd (!%p268_p2), %s190_s28, 4294967264  ;;  %p15_p4 = scmp.ge.s32.totalorder %s445_s15, 4   ;;  %s598_s9 = smov %s393_s10 }
  0x58   : > { %s599_s10 = smov %s397_s11  ;;  %s600_s11 = smov %s457_s18 }
  0x59   : > { %s601_s12 = smov %s445_s15  ;;  %17 = sbr.rel (!%p15_p4) target bundleno = 5 (0x5), region = 73 }
  0x60   :  { %195 = vsyncpa [#allocation3], 1 }
  0x61   :  { %197 = vsyncpa [#allocation3 + $0x1], 1 }
  0x62   :  { %198 = vsyncpa [#allocation4], 1 }
  0x63   :  { %200 = vsyncpa [#allocation4 + $0x1], 1 }

</bundles_post_ra>
